<compile_context>
chip_gen: v7x
topology: tpu7x:2x2x1
jax: 0.10.0
libtpu: 0.0.40
codegen_flags: <defaults>
</compile_context>

<pallas_src>
import math

import jax
import jax.numpy as jnp
from jax.experimental import pallas as pl
from jax.experimental.pallas import tpu as pltpu


def _round_up(x, m):
    return (x + m - 1) // m * m


def _critic_kernel(s_ref, a_ref, w1s_ref, w1a_ref, b1_ref, w2_ref, b2_ref,
                   w3_ref, b3_ref, o_ref):
    # Activations are [features, batch_tile]; batch is on the lane axis.
    # fc1: h1 = W1_s @ s + W1_a @ a + b1  (f32 accumulation on the MXU)
    h1 = jnp.dot(w1s_ref[...], s_ref[...], preferred_element_type=jnp.float32)
    h1 = h1 + jnp.dot(w1a_ref[...], a_ref[...], preferred_element_type=jnp.float32)
    h1 = jnp.maximum(h1 + b1_ref[...], 0.0)                 # f32 VPU (v5e-safe)

    # fc2
    h2 = jnp.dot(w2_ref[...], h1.astype(w2_ref.dtype),
                 preferred_element_type=jnp.float32)
    h2 = jnp.maximum(h2 + b2_ref[...], 0.0)

    # q head (fc2 -> 1): VPU multiply + sublane reduce instead of an N=1 MXU
    # matmul; b3 comes in as a scalar from SMEM.
    q = jnp.sum(h2 * w3_ref[...], axis=0, keepdims=True) + b3_ref[0]
    o_ref[...] = q.astype(o_ref.dtype)                      # lane-dense (1, Bt) store


def critic_forward(state, action, params, *, block_batch=512,
                   compute_dtype=jnp.float32):
    """q = q1(relu(fc2(relu(fc1([state, action])))))   state: [B, S], action: [B, A]."""
    fc1_w, fc1_b, fc2_w, fc2_b, q1_w, q1_b = params
    B, S = state.shape
    A = action.shape[1]
    fc1 = fc1_w.shape[0]
    fc2 = fc2_w.shape[0]

    # Split fc1's weight so the [state, action] concat never materializes.
    w1_s = fc1_w[:, :S].astype(compute_dtype)            # (fc1, S)
    w1_a = fc1_w[:, S:].astype(compute_dtype)            # (fc1, A)
    b1 = fc1_b.reshape(fc1, 1).astype(jnp.float32)       # column biases (broadcast over lanes)
    w2 = fc2_w.astype(compute_dtype)                     # (fc2, fc1)
    b2 = fc2_b.reshape(fc2, 1).astype(jnp.float32)
    w3 = q1_w.reshape(fc2, 1).astype(jnp.float32)        # head as a column -> VPU path
    b3 = q1_b.reshape(1).astype(jnp.float32)             # scalar, lives in SMEM

    # Batch tile: multiple of 128 lanes; big tiles amortize per-step overhead.
    bt = max(128, min(_round_up(block_batch, 128), _round_up(B, 128)))
    b_pad = _round_up(B, bt)
    grid = (b_pad // bt,)

    # Transposed, zero-padded inputs: [features, batch] (layout plumbing only).
    state_t = jnp.pad(state.T.astype(compute_dtype), ((0, 0), (0, b_pad - B)))
    action_t = jnp.pad(action.T.astype(compute_dtype), ((0, 0), (0, b_pad - B)))

    out = pl.pallas_call(
        _critic_kernel,
        grid=grid,
        in_specs=[
            pl.BlockSpec((S, bt), lambda i: (0, i)),       # state tile (batch on lanes)
            pl.BlockSpec((A, bt), lambda i: (0, i)),       # action tile
            pl.BlockSpec((fc1, S), lambda i: (0, 0)),      # weights: constant block index
            pl.BlockSpec((fc1, A), lambda i: (0, 0)),      #   -> stay VMEM resident
            pl.BlockSpec((fc1, 1), lambda i: (0, 0)),
            pl.BlockSpec((fc2, fc1), lambda i: (0, 0)),
            pl.BlockSpec((fc2, 1), lambda i: (0, 0)),
            pl.BlockSpec((fc2, 1), lambda i: (0, 0)),
            pl.BlockSpec(memory_space=pltpu.MemorySpace.SMEM),   # b3 scalar
        ],
        out_specs=pl.BlockSpec((1, bt), lambda i: (0, i)),
        out_shape=jax.ShapeDtypeStruct((1, b_pad), jnp.float32),
        compiler_params=pltpu.CompilerParams(dimension_semantics=("parallel",)),
    )(state_t, action_t, w1_s, w1_a, b1, w2, b2, w3, b3)

    return out[0, :B].reshape(B, 1)


def init_params(key, input_dims, fc1_dims, fc2_dims, n_actions):
    """PyTorch nn.Linear layout + default init: U(+/- 1/sqrt(fan_in))."""
    keys = jax.random.split(key, 6)

    def lin(kw, kb, fan_in, fan_out):
        bound = 1.0 / math.sqrt(fan_in)
        w = jax.random.uniform(kw, (fan_out, fan_in), jnp.float32, -bound, bound)
        b = jax.random.uniform(kb, (fan_out,), jnp.float32, -bound, bound)
        return w, b

    fc1_w, fc1_b = lin(keys[0], keys[1], input_dims + n_actions, fc1_dims)
    fc2_w, fc2_b = lin(keys[2], keys[3], fc1_dims, fc2_dims)
    q1_w, q1_b = lin(keys[4], keys[5], fc2_dims, 1)
    return (fc1_w, fc1_b, fc2_w, fc2_b, q1_w, q1_b)


if __name__ == "__main__":
    # input_dims = [16], n_actions = 4, fc1_dims = fc2_dims = 32, batch = 2
    batch = 2
    input_dims = 16
    n_actions = 4
    fc1_dims = 32
    fc2_dims = 32

    key = jax.random.PRNGKey(0)
    k_state, k_action, k_params = jax.random.split(key, 3)

    state = jax.random.normal(k_state, (batch, input_dims), jnp.float32)
    action = jax.random.normal(k_action, (batch, n_actions), jnp.float32)
    params = init_params(k_params, input_dims, fc1_dims, fc2_dims, n_actions)

    # f32 path (exact match to the PyTorch math).
    q = critic_forward(state, action, params)
    jax.block_until_ready(q)

    fc1_w, fc1_b, fc2_w, fc2_b, q1_w, q1_b = params
    x = jnp.concatenate([state, action], axis=1)
    ref = jnp.maximum(x @ fc1_w.T + fc1_b, 0.0)
    ref = jnp.maximum(ref @ fc2_w.T + fc2_b, 0.0)
    ref = ref @ q1_w.T + q1_b

    assert q.shape == (batch, 1)
    assert jnp.allclose(q, ref, atol=1e-5, rtol=1e-5)

    # bf16 matmul operands (MXU-friendly on v5e/v6e/v7x), f32 accumulation.
    q_bf16 = critic_forward(state, action, params, compute_dtype=jnp.bfloat16)
    jax.block_until_ready(q_bf16)
    assert q_bf16.shape == (batch, 1)
    assert jnp.allclose(q_bf16, ref, atol=5e-2, rtol=5e-2)

    print("KERNEL_OK")
</pallas_src>

<mosaic_0001>
module attributes {stable_mosaic.version = 11 : i64} {
  func.func @_critic_kernel(%arg0: i32, %arg1: memref<16x128xf32, #tpu.memory_space<vmem>>, %arg2: memref<4x128xf32, #tpu.memory_space<vmem>>, %arg3: memref<32x16xf32, #tpu.memory_space<vmem>>, %arg4: memref<32x4xf32, #tpu.memory_space<vmem>>, %arg5: memref<32x1xf32, #tpu.memory_space<vmem>>, %arg6: memref<32x32xf32, #tpu.memory_space<vmem>>, %arg7: memref<32x1xf32, #tpu.memory_space<vmem>>, %arg8: memref<32x1xf32, #tpu.memory_space<vmem>>, %arg9: memref<1xf32, #tpu.memory_space<smem>>, %arg10: memref<1x128xf32, #tpu.memory_space<vmem>>) attributes {dimension_semantics = [#tpu.dimension_semantics<parallel>], iteration_bounds = array<i64: 1>, scalar_prefetch = 0 : i64, scratch_operands = 0 : i64, tpu.core_type = #tpu.core_type<tc>, window_params = [{transform_indices = @transform_0, window_bounds = array<i64: 16, 128>}, {transform_indices = @transform_1, window_bounds = array<i64: 4, 128>}, {pipeline_mode = #tpu.pipeline_mode<synchronous>, transform_indices = @transform_2, window_bounds = array<i64: 32, 16>}, {pipeline_mode = #tpu.pipeline_mode<synchronous>, transform_indices = @transform_3, window_bounds = array<i64: 32, 4>}, {pipeline_mode = #tpu.pipeline_mode<synchronous>, transform_indices = @transform_4, window_bounds = array<i64: 32, 1>}, {pipeline_mode = #tpu.pipeline_mode<synchronous>, transform_indices = @transform_5, window_bounds = array<i64: 32, 32>}, {pipeline_mode = #tpu.pipeline_mode<synchronous>, transform_indices = @transform_6, window_bounds = array<i64: 32, 1>}, {pipeline_mode = #tpu.pipeline_mode<synchronous>, transform_indices = @transform_7, window_bounds = array<i64: 32, 1>}, {transform_indices = @transform_8, window_bounds = array<i64: 1>}, {transform_indices = @transform_9, window_bounds = array<i64: 1, 128>}]} {
    %c0 = arith.constant 0 : index
    %c0_0 = arith.constant 0 : index
    %0 = vector.load %arg3[%c0, %c0_0] : memref<32x16xf32, #tpu.memory_space<vmem>>, vector<32x16xf32>
    %c0_1 = arith.constant 0 : index
    %c0_2 = arith.constant 0 : index
    %1 = vector.load %arg1[%c0_1, %c0_2] : memref<16x128xf32, #tpu.memory_space<vmem>>, vector<16x128xf32>
    %cst = arith.constant dense<0.000000e+00> : vector<32x128xf32>
    %2 = tpu.matmul %0, %1, %cst {dimension_numbers = #tpu.dot_dimension_numbers<[1], [0], [0], [1], [0, 0, 1, 1], [], []>} : vector<32x16xf32>, vector<16x128xf32>, vector<32x128xf32> -> vector<32x128xf32>
    %c0_3 = arith.constant 0 : index
    %c0_4 = arith.constant 0 : index
    %3 = vector.load %arg4[%c0_3, %c0_4] : memref<32x4xf32, #tpu.memory_space<vmem>>, vector<32x4xf32>
    %c0_5 = arith.constant 0 : index
    %c0_6 = arith.constant 0 : index
    %4 = vector.load %arg2[%c0_5, %c0_6] : memref<4x128xf32, #tpu.memory_space<vmem>>, vector<4x128xf32>
    %cst_7 = arith.constant dense<0.000000e+00> : vector<32x128xf32>
    %5 = tpu.matmul %3, %4, %cst_7 {dimension_numbers = #tpu.dot_dimension_numbers<[1], [0], [0], [1], [0, 0, 1, 1], [], []>} : vector<32x4xf32>, vector<4x128xf32>, vector<32x128xf32> -> vector<32x128xf32>
    %6 = arith.addf %2, %5 : vector<32x128xf32>
    %c0_8 = arith.constant 0 : index
    %c0_9 = arith.constant 0 : index
    %7 = vector.load %arg5[%c0_8, %c0_9] : memref<32x1xf32, #tpu.memory_space<vmem>>, vector<32x1xf32>
    %8 = vector.broadcast %7 : vector<32x1xf32> to vector<32x128xf32>
    %9 = arith.addf %6, %8 : vector<32x128xf32>
    %cst_10 = arith.constant 0.000000e+00 : f32
    %10 = vector.broadcast %cst_10 : f32 to vector<32x128xf32>
    %11 = arith.maximumf %9, %10 : vector<32x128xf32>
    %c0_11 = arith.constant 0 : index
    %c0_12 = arith.constant 0 : index
    %12 = vector.load %arg6[%c0_11, %c0_12] : memref<32x32xf32, #tpu.memory_space<vmem>>, vector<32x32xf32>
    %cst_13 = arith.constant dense<0.000000e+00> : vector<32x128xf32>
    %13 = tpu.matmul %12, %11, %cst_13 {dimension_numbers = #tpu.dot_dimension_numbers<[1], [0], [0], [1], [0, 0, 1, 1], [], []>} : vector<32x32xf32>, vector<32x128xf32>, vector<32x128xf32> -> vector<32x128xf32>
    %c0_14 = arith.constant 0 : index
    %c0_15 = arith.constant 0 : index
    %14 = vector.load %arg7[%c0_14, %c0_15] : memref<32x1xf32, #tpu.memory_space<vmem>>, vector<32x1xf32>
    %15 = vector.broadcast %14 : vector<32x1xf32> to vector<32x128xf32>
    %16 = arith.addf %13, %15 : vector<32x128xf32>
    %cst_16 = arith.constant 0.000000e+00 : f32
    %17 = vector.broadcast %cst_16 : f32 to vector<32x128xf32>
    %18 = arith.maximumf %16, %17 : vector<32x128xf32>
    %c0_17 = arith.constant 0 : index
    %c0_18 = arith.constant 0 : index
    %19 = vector.load %arg8[%c0_17, %c0_18] : memref<32x1xf32, #tpu.memory_space<vmem>>, vector<32x1xf32>
    %20 = vector.broadcast %19 : vector<32x1xf32> to vector<32x128xf32>
    %21 = arith.mulf %18, %20 : vector<32x128xf32>
    %cst_19 = arith.constant dense<0.000000e+00> : vector<128xf32>
    %22 = vector.multi_reduction <add>, %21, %cst_19 [0] : vector<32x128xf32> to vector<128xf32>
    %23 = vector.shape_cast %22 : vector<128xf32> to vector<1x128xf32>
    %c0_20 = arith.constant 0 : index
    %24 = memref.load %arg9[%c0_20] : memref<1xf32, #tpu.memory_space<smem>>
    %25 = vector.broadcast %24 : f32 to vector<1x128xf32>
    %26 = arith.addf %23, %25 : vector<1x128xf32>
    %c0_21 = arith.constant 0 : index
    %c0_22 = arith.constant 0 : index
    %27 = vector.load %arg10[%c0_21, %c0_22] : memref<1x128xf32, #tpu.memory_space<vmem>>, vector<1x128xf32>
    tpu.vector_store %arg10[%c0_21, %c0_22], %26 {strides = array<i32>} : memref<1x128xf32, #tpu.memory_space<vmem>>, vector<1x128xf32>,
    return
  }
  func.func @transform_0(%arg0: i32) -> (i32, i32) {
    %c0_i32 = arith.constant 0 : i32
    %c0_i32_0 = arith.constant 0 : i32
    return %c0_i32, %arg0 : i32, i32
  }
  func.func @transform_1(%arg0: i32) -> (i32, i32) {
    %c0_i32 = arith.constant 0 : i32
    %c0_i32_0 = arith.constant 0 : i32
    return %c0_i32, %arg0 : i32, i32
  }
  func.func @transform_2(%arg0: i32) -> (i32, i32) {
    %c0_i32 = arith.constant 0 : i32
    %c0_i32_0 = arith.constant 0 : i32
    %c0_i32_1 = arith.constant 0 : i32
    return %c0_i32, %c0_i32_0 : i32, i32
  }
  func.func @transform_3(%arg0: i32) -> (i32, i32) {
    %c0_i32 = arith.constant 0 : i32
    %c0_i32_0 = arith.constant 0 : i32
    %c0_i32_1 = arith.constant 0 : i32
    return %c0_i32, %c0_i32_0 : i32, i32
  }
  func.func @transform_4(%arg0: i32) -> (i32, i32) {
    %c0_i32 = arith.constant 0 : i32
    %c0_i32_0 = arith.constant 0 : i32
    %c0_i32_1 = arith.constant 0 : i32
    return %c0_i32, %c0_i32_0 : i32, i32
  }
  func.func @transform_5(%arg0: i32) -> (i32, i32) {
    %c0_i32 = arith.constant 0 : i32
    %c0_i32_0 = arith.constant 0 : i32
    %c0_i32_1 = arith.constant 0 : i32
    return %c0_i32, %c0_i32_0 : i32, i32
  }
  func.func @transform_6(%arg0: i32) -> (i32, i32) {
    %c0_i32 = arith.constant 0 : i32
    %c0_i32_0 = arith.constant 0 : i32
    %c0_i32_1 = arith.constant 0 : i32
    return %c0_i32, %c0_i32_0 : i32, i32
  }
  func.func @transform_7(%arg0: i32) -> (i32, i32) {
    %c0_i32 = arith.constant 0 : i32
    %c0_i32_0 = arith.constant 0 : i32
    %c0_i32_1 = arith.constant 0 : i32
    return %c0_i32, %c0_i32_0 : i32, i32
  }
  func.func @transform_8(%arg0: i32) -> i32 {
    %c0_i32 = arith.constant 0 : i32
    %c0_i32_0 = arith.constant 0 : i32
    return %c0_i32 : i32
  }
  func.func @transform_9(%arg0: i32) -> (i32, i32) {
    %c0_i32 = arith.constant 0 : i32
    %c0_i32_0 = arith.constant 0 : i32
    return %c0_i32, %arg0 : i32, i32
  }
}

</mosaic_0001>

<bundles_post_ra>
// kernel: tpu_custom_call.1
= control target key start
LH: loop header
LB: loop body
LE: loop exit
PB: predicated region body
PF: predicated region fallthrough
CT: control target
= control target key end

     0   :  { %vm58_vm0 = vcmask 1043456   ;;  %vm45_vm1 = vcmask 31744   ;;  %v570_v7 = vmov 0   ;;  %vm147_vm2 = vcmask 130048   ;;  %s730_s0 = inlined_call_operand.vmem [shape: f32[16,128], index: 0, kind: input, shape index: {}]   ;;  %s731_s1 = inlined_call_operand.vmem [shape: f32[4,128], index: 1, kind: input, shape index: {}]   ;;  %s732_s2 = inlined_call_operand.vmem [shape: f32[32,16], index: 2, kind: input, shape index: {}]   ;;  %s733_s3 = inlined_call_operand.vmem [shape: f32[32,4], index: 3, kind: input, shape index: {}]   ;;  %s734_s4 = inlined_call_operand.vmem [shape: f32[32,1], index: 4, kind: input, shape index: {}]   ;;  %s735_s5 = inlined_call_operand.vmem [shape: f32[32,32], index: 5, kind: input, shape index: {}]   ;;  %s736_s6 = inlined_call_operand.vmem [shape: f32[32,1], index: 6, kind: input, shape index: {}]   ;;  %s737_s7 = inlined_call_operand.vmem [shape: f32[32,1], index: 7, kind: input, shape index: {}]   ;;  %s738_s8 = inlined_call_operand.<no memory space> [shape: f32[1], index: 8, kind: input, shape index: {}]   ;;  %s739_s9 = inlined_call_operand.hbm [shape: f32[1,128], index: 9, kind: output, shape index: {}]  }
   0x1   :  { %v44_v0 = vld [vmem:[%s731_s1] sm:$0xf]  ;;  %v41_v2 = vld [vmem:[%s733_s3 + $0x8] sm:$0xff]  ;;  %v42_v5 = vld [vmem:[%s733_s3 + $0x10] sm:$0xff]  ;;  %544 = vset.pattern.permute.xlu0 %v570_v7  ;;  %545 = vset.pattern.permute.xlu1 %v570_v7 }
   0x2   :  { %v40_v1 = vld [vmem:[%s733_s3] sm:$0xff]  ;;  %494 = vmatprep.subr.msk.mxu0 %vm58_vm0, %v44_v0  ;;  %v39_v4 = vld [vmem:[%s730_s0 + $0x8] sm:$0xff]  ;;  %v43_v9 = vld [vmem:[%s733_s3 + $0x18] sm:$0xff] }
   0x3   :  { %496 = vmatprep.mubr.msk.f32.mxu0 %vm45_vm1, %v40_v1  ;;  %v38_v3 = vld [vmem:[%s730_s0] sm:$0xff]  ;;  %495 = vmatpush3.msk.msra.mxu0 %vm58_vm0, %v44_v0  ;;  %v247_v10 = vld [vmem:[%s734_s4 + $0x10] sm:$0xff]  ;;  %v246_v12 = vld [vmem:[%s734_s4 + $0x8] sm:$0xff] }
   0x4   :  { %v526_v6 = vpack.c.bf16 %v39_v4, %v38_v3  ;;  %497 = vmatmul.mubr.msk.f32.vlgmr.msra.gmra.mrb[0].mxu0 %vm45_vm1, %v41_v2  ;;  %v245_v8 = vld [vmem:[%s734_s4] sm:$0xff]  ;;  %261 = vperm.xlu1 %545, %v247_v10   ;;  %v248_v13 = vld [vmem:[%s734_s4 + $0x18] sm:$0xff] }
   0x5   :  { %499 = vmatprep.mubr.msk.f32.mxu0 %vm45_vm1, %v42_v5  ;;  %v34_v11 = vld [vmem:[%s732_s2] sm:$0xff]  ;;  %251 = vperm.xlu0 %544, %v245_v8  }
   0x6   :  { %527 = vmatprep.subr.bf16.mxu0 %v526_v6 }
   0x7   :  { %529 = vmatpush3.bf16.msra.mxu0 %v526_v6 }
   0x8   :  { %500 = vmatmul.mubr.msk.f32.gmra.mrb[2].mxu0 %vm45_vm1, %v43_v9 }
   0x9   :  { %15 = vsyncpa [#allocation4], 0  ;;  %506 = vmatprep.mubr.msk.f32.mxu0 %vm147_vm2, %v34_v11  ;;  %v35_v14 = vld [vmem:[%s732_s2 + $0x8] sm:$0xff]  ;;  %v36_v15 = vld [vmem:[%s732_s2 + $0x10] sm:$0xff]  ;;  %256 = vperm.xlu0 %544, %v246_v12   ;;  %vm305_vm3 = vcmask 261120   ;;  %s571_s12 = smov [#allocation3]  }
   0xa   :  { %266 = vperm.xlu1 %545, %v248_v13   ;;  %v281_v16 = vld [vmem:[%s736_s6] sm:$0xff]  ;;  %v282_v17 = vld [vmem:[%s736_s6 + $0x8] sm:$0xff]  ;;  %v37_v18 = vld [vmem:[%s732_s2 + $0x18] sm:$0xff]  ;;  %s454_s13 = sshll.u32 %s571_s12, 4  ;;  %s455_s13 = int_to_ptr.vmem [resolvable:$true] %s454_s13 }
   0xb   :  { %v283_v19 = vld [vmem:[%s736_s6 + $0x10] sm:$0xff]  ;;  %v284_v20 = vld [vmem:[%s736_s6 + $0x18] sm:$0xff]  ;;  %v407_v21 = vld [vmem:[%s737_s7] sm:$0xff]  ;;  %s546_s14 = scalar_lea.vmem %s455_s13, 16  ;;  %s550_s4 = scalar_lea.vmem %s455_s13, 32 }
   0xc   :  { %507 = vmatmul.mubr.msk.f32.vlgmr.msra.gmra.mrb[0].mxu0 %vm147_vm2, %v35_v14  ;;  %v408_v22 = vld [vmem:[%s737_s7 + $0x8] sm:$0xff]  ;;  %v409_v23 = vld [vmem:[%s737_s7 + $0x10] sm:$0xff]  ;;  %v410_v24 = vld [vmem:[%s737_s7 + $0x18] sm:$0xff]  ;;  %p547_p0 = scmp.ne.s32.totalorder %s455_s13, %s546_s14  ;;  %p551_p1 = scmp.lt.s32.totalorder %s455_s13, %s455_s13 }
   0xd   :  { %509 = vmatprep.mubr.msk.f32.mxu0 %vm147_vm2, %v36_v15  ;;  %287 = vperm.xlu0 %544, %v281_v16   ;;  %v277_v25 = vld [vmem:[%s735_s5] sm:$0xff]  ;;  %v278_v44 = vld [vmem:[%s735_s5 + $0x8] sm:$0xff]  ;;  %v279_v45 = vld [vmem:[%s735_s5 + $0x10] sm:$0xff]  ;;  %v445_v15 = vstv %s738_s8  ;;  %p552_p2 = scmp.lt.s32.totalorder %s550_s4, %s546_s14 }
   0xe   :  { %292 = vperm.xlu1 %545, %v282_v17   ;;  %520 = vmatprep.mubr.msk.f32.mxu1 %vm305_vm3, %v277_v25  ;;  %v280_v46 = vld [vmem:[%s735_s5 + $0x18] sm:$0xff] }
   0xf   :  { %p553_p3 = por %p552_p2, %p551_p1 }
  0x10   :  { %510 = vmatmul.mubr.msk.f32.gmra.mrb[2].mxu0 %vm147_vm2, %v37_v18 }
  0x11   :  { %297 = vperm.xlu0 %544, %v283_v19   ;;  %p554_p4 = pnand %p553_p3, %p547_p0 }
  0x12   :  { %302 = vperm.xlu1 %545, %v284_v20  }
  0x15   :  { %413 = vperm.xlu0 %544, %v407_v21  }
  0x16   :  { %418 = vperm.xlu1 %545, %v408_v22  }
  0x19   :  { %423 = vperm.xlu0 %544, %v409_v23  }
  0x1a   :  { %428 = vperm.xlu1 %545, %v410_v24  }
  0x83   :  { %v262_v27 = vpop.permute.xlu1 %261 }
  0x84   :  { %v252_v26 = vpop.permute.xlu0 %251 }
  0x88   :  { %v257_v28 = vpop.permute.xlu0 %256 }
  0x89   :  { %v267_v34 = vpop.permute.xlu1 %266 }
  0x8c   :  { %v288_v47 = vpop.permute.xlu0 %287 }
  0x8d   :  { %v293_v48 = vpop.permute.xlu1 %292 }
  0x90   :  { %v298_v49 = vpop.permute.xlu0 %297 }
  0x91   :  { %v303_v50 = vpop.permute.xlu1 %302 }
  0x94   :  { %v414_v55 = vpop.permute.xlu0 %413 }
  0x95   :  { %v419_v57 = vpop.permute.xlu1 %418 }
  0x98   :  { %v424_v4 = vpop.permute.xlu0 %423 }
  0x99   :  { %v429_v6 = vpop.permute.xlu1 %428 }
  0xdf   :  { %v508_v29 = vpop.f32.mrb[0].mxu0 }
  0xe0   :  { %v270_v30 = vadd.f32 %v508_v29, %v257_v28  ;;  %v226_v31 = vpop.f32.mrb[1].mxu0 }
  0xe1   :  { %v269_v32 = vadd.f32 %v252_v26, %v226_v31 }
  0xe2   :  { %v274_v33 = vmax.f32 %v270_v30, 0.0 }
  0xe3   :  { %v273_v35 = vmax.f32 %v269_v32, 0.0  ;;  %v511_v36 = vpop.f32.mrb[2].mxu0 }
  0xe4   :  { %v272_v37 = vadd.f32 %v511_v36, %v267_v34  ;;  %v236_v38 = vpop.f32.mrb[3].mxu0 }
  0xe5   :  { %v271_v39 = vadd.f32 %v262_v27, %v236_v38  ;;  %v530_v40 = vpack.c.bf16 %v274_v33, %v273_v35 }
  0xe6   :  { %v276_v41 = vmax.f32 %v272_v37, 0.0 }
  0xe7   :  { %v275_v42 = vmax.f32 %v271_v39, 0.0  ;;  %531 = vmatprep.subr.bf16.mxu1 %v530_v40 }
  0xe8   :  { %533 = vmatpush3.bf16.msra.mxu1 %v530_v40 }
  0xe9   :  { %v534_v43 = vpack.c.bf16 %v276_v41, %v275_v42 }
  0xeb   :  { %535 = vmatprep.subr.bf16.mxu1 %v534_v43 }
  0xec   :  { %537 = vmatpush3.bf16.msra.mxu1 %v534_v43 }
  0xef   :  { %521 = vmatmul.mubr.msk.f32.vlgmr.msra.gmra.mrb[0].mxu1 %vm305_vm3, %v278_v44 }
  0xf0   :  { %523 = vmatprep.mubr.msk.f32.mxu1 %vm305_vm3, %v279_v45 }
  0xf3   :  { %524 = vmatmul.mubr.msk.f32.gmra.mrb[2].mxu1 %vm305_vm3, %v280_v46 }
 0x1c2   :  { %v522_v51 = vpop.f32.mrb[0].mxu1 }
 0x1c3   :  { %v390_v52 = vadd.f32 %v522_v51, %v293_v48  ;;  %v384_v53 = vpop.f32.mrb[1].mxu1 }
 0x1c4   :  { %v385_v54 = vadd.f32 %v384_v53, %v288_v47 }
 0x1c5   :  { %v404_v56 = vmax.f32 %v390_v52, 0.0 }
 0x1c6   :  { %v403_v58 = vmax.f32 %v385_v54, 0.0  ;;  %v525_v59 = vpop.f32.mrb[2].mxu1 }
 0x1c7   :  { %v432_v60 = vmul.f32 %v419_v57, %v404_v56  ;;  %v400_v61 = vadd.f32 %v525_v59, %v303_v50  ;;  %v394_v62 = vpop.f32.mrb[3].mxu1 }
 0x1c8   :  { %v431_v63 = vmul.f32 %v414_v55, %v403_v58  ;;  %v395_v0 = vadd.f32 %v394_v62, %v298_v49 }
 0x1c9   :  { %v406_v2 = vmax.f32 %v400_v61, 0.0 }
 0x1ca   :  { %v435_v1 = vadd.f32 %v432_v60, %v431_v63  ;;  %v405_v3 = vmax.f32 %v395_v0, 0.0 }
 0x1cb   :  { %v434_v7 = vmul.f32 %v429_v6, %v406_v2 }
 0x1cc   :  { %v433_v5 = vmul.f32 %v424_v4, %v405_v3 }
 0x1ce   :  { %v436_v8 = vadd.f32 %v435_v1, %v433_v5 }
 0x1d0   :  { %v437_v9 = vadd.f32 %v436_v8, %v434_v7 }
 0x1d2   :  { %v438_v10 = vrot.slane %v437_v9, 4 }
 0x1d4   :  { %v439_v11 = vadd.f32 %v438_v10, %v437_v9 }
 0x1d6   :  { %v440_v12 = vrot.slane %v439_v11, 2 }
 0x1d8   :  { %v441_v13 = vadd.f32 %v440_v12, %v439_v11 }
 0x1da   :  { %v442_v14 = vrot.slane %v441_v13, 1 }
 0x1dc   :  { %v443_v16 = vadd.f32 %v442_v14, %v441_v13 }
 0x1de   :  { %v446_v17 = vadd.f32 %v445_v15, %v443_v16 }
 0x1e0   :  { %447 = vst [vmem:[#allocation3] sm:$0x1] %v446_v17 }
 0x1e1   :  { %557 = shalt.err (!%p554_p4)
}
 0x1e2   :  { %s558_s17 = scalar_lea.hbm %s739_s9, 16 }
 0x1e3   :  { %p559_p5 = scmp.ne.s32.totalorder %s739_s9, %s558_s17  ;;  %p562_p6 = scmp.lt.u32.totalorder %s558_s17, %s739_s9 }
 0x1e5   :  { %p564_p7 = pnand %p562_p6, %p559_p5 }
 0x1e7   :  { %567 = shalt.err (!%p564_p7)
}
 0x1e8   :  { %457 = dma.vmem_to_hbm [thread:$0]  %s455_s13, 16, %s739_s9, [#allocation4]  }
 0x1e9   :  { %568 = dma.done.wait [#allocation4], 16  }
 0x1ea   :  { %569 = vsyncadd [#allocation4], 4294967280 }
 0x1eb   :  { %461 = vsyncpa [#allocation4], 1 }

</bundles_post_ra>
